<compile_context>
chip_gen: v7x
topology: tpu7x:2x2x1
jax: 0.10.0
libtpu: 0.0.40
codegen_flags: <defaults>
</compile_context>

<pallas_src>
import numpy as np

import jax
import jax.numpy as jnp
from jax.experimental import pallas as pl
from jax.experimental.pallas import tpu as pltpu

# Constants from the reference script (2d_wave/gen_data.py)
GRID_SIZE = 100
XE, XS = 0.6, -0.6
DX = (XE - XS) / GRID_SIZE          # 0.012
IGST = 10


def _round_up(x, k):
    return ((x + k - 1) // k) * k


def _centdif_roll_kernel(mask_ref, u_ref, out_ref):
    """VPU/XLU stencil path.  mask_ref: (1, L) = {0, -1/(60*dx)} per lane."""
    scale = mask_ref[...]                       # (1, L)
    u0 = u_ref[0]                               # (tile_m, L) dense slab
    u1 = u_ref[1]
    L = u0.shape[-1]

    def stencil(x):
        # pltpu.roll(x, k, ax)[..., i] == x[..., (i - k) % L]; this build
        # requires non-negative shift/axis, hence the `% L` normalization.
        def rot(k):
            return pltpu.roll(x, k % L, 1)
        # -x[i-3] + 9x[i-2] - 45x[i-1] + 45x[i+1] - 9x[i+2] + x[i+3]
        raw = ((rot(L - 1) - rot(1)) * 45.0
               + (rot(2) - rot(L - 2)) * 9.0
               + (rot(L - 3) - rot(3)))
        # scale = -1/(60*dx) on interior lanes, 0 elsewhere (ghosts, pad,
        # circular wrap-around -- valid because igst >= 3).
        return raw * scale

    du0 = stencil(u0)                           # = -du[:,0,:]
    du1 = stencil(u1)                           # = -du[:,1,:]

    # out = -adu, minus sign already folded into du0/du1.
    out_ref[0] = u1 * du0 + u0 * du1
    out_ref[1] = 2.0 * du0 + u1 * du1


def _centdif_mxu_kernel(s_ref, u_ref, out_ref):
    """MXU stencil path.  s_ref: (L, L) banded matrix with coeffs, interior
    mask, sign and 1/(60*dx) baked in."""
    S = s_ref[...]
    u0 = u_ref[0]                               # (tile_m, L)
    u1 = u_ref[1]
    du0 = jnp.dot(u0, S, preferred_element_type=jnp.float32,
                  precision=jax.lax.Precision.HIGHEST)      # = -du[:,0,:]
    du1 = jnp.dot(u1, S, preferred_element_type=jnp.float32,
                  precision=jax.lax.Precision.HIGHEST)      # = -du[:,1,:]
    out_ref[0] = u1 * du0 + u0 * du1
    out_ref[1] = 2.0 * du0 + u1 * du1


def centdif(u, dx=DX, igst=IGST, tile_m=None, stencil=None):
    u = jnp.asarray(u, jnp.float32)
    m, n, l = u.shape
    if n < 2:
        raise ValueError("CentDif requires at least 2 channels (n >= 2).")
    if igst < 3:
        raise ValueError("igst must be >= 3 (stencil half-width).")

    # Lane-dense padding of the grid axis (padded lanes are masked to zero).
    L = _round_up(l, 128)
    if stencil is None:
        stencil = "mxu" if L <= 256 else "roll"

    # Re-layout: (m, n, l) -> (2, m, L); only channels 0/1 are ever consumed.
    u2 = jnp.transpose(u[:, :2, :], (1, 0, 2))
    if L != l:
        u2 = jnp.pad(u2, ((0, 0), (0, 0), (0, L - l)))

    # Fold the minus sign of `-adu` into the stencil scale.
    scale = -1.0 / (60.0 * float(dx))
    lane = np.arange(L)
    interior = (lane >= igst) & (lane < l - igst)

    if stencil == "mxu":
        # Banded (L, L) matrix: du_neg = u_slab @ S.
        S = np.zeros((L, L), np.float32)
        ii = np.arange(igst, l - igst)
        for off, c in ((-3, -1.0), (-2, 9.0), (-1, -45.0),
                       (1, 45.0), (2, -9.0), (3, 1.0)):
            S[ii + off, ii] = c * scale
        coef = jnp.asarray(S)
        coef_spec = pl.BlockSpec((L, L), lambda i: (0, 0))
        kernel = _centdif_mxu_kernel
        flops = 2 * (2 * m * L * L) + 6 * m * L
    elif stencil == "roll":
        mask = np.where(interior, np.float32(scale), np.float32(0.0))
        coef = jnp.asarray(mask).reshape(1, L)
        coef_spec = pl.BlockSpec((1, L), lambda i: (0, 0))
        kernel = _centdif_roll_kernel
        flops = 22 * m * L
    else:
        raise ValueError(f"unknown stencil mode: {stencil!r}")

    # Batch tiling: ~2 MiB per input block (2 * tile_m * L * 4 bytes); with the
    # (2, tile_m, L) layout there is no sublane padding, so in+out double
    # buffers plus live temporaries stay well under the explicit 32 MiB limit.
    if tile_m is None:
        tile_m = max(8, ((2 << 20) // (8 * L)) // 8 * 8)
    if m >= 16:
        # >= 2 grid steps so both v7x TensorCores get work (free on v5e/v6e).
        tile_m = min(tile_m, -(-m // 2))
    tile_m = min(tile_m, m)
    if tile_m != m:
        tile_m = max(8, (tile_m // 8) * 8)      # sublane-dim blocks 8-aligned

    grid_m = pl.cdiv(m, tile_m)

    out2 = pl.pallas_call(
        kernel,
        out_shape=jax.ShapeDtypeStruct((2, m, L), jnp.float32),
        grid=(grid_m,),
        in_specs=[coef_spec,
                  pl.BlockSpec((2, tile_m, L), lambda i: (0, i, 0))],
        out_specs=pl.BlockSpec((2, tile_m, L), lambda i: (0, i, 0)),
        compiler_params=pltpu.CompilerParams(
            dimension_semantics=("parallel",),
            vmem_limit_bytes=32 * 1024 * 1024),
        cost_estimate=pl.CostEstimate(
            flops=int(flops),
            transcendentals=0,
            bytes_accessed=int(16 * m * L + coef.size * 4)),
    )(coef, u2)

    # Back to the module's (m, n, l) layout; channels >= 2 are zero (as in the
    # reference, which never writes them).
    out = jnp.transpose(out2, (1, 0, 2))[:, :, :l]
    if n > 2:
        out = jnp.pad(out, ((0, 0), (0, n - 2), (0, 0)))
    return out


def _centdif_ref(u, dx=DX, igst=IGST):
    """Pure-JAX reference mirroring the PyTorch forward."""
    u = jnp.asarray(u, jnp.float32)
    m, n, l = u.shape
    du = jnp.zeros_like(u)
    core = (-u[:, :, igst - 3:l - igst - 3]
            + 9.0 * u[:, :, igst - 2:l - igst - 2]
            - 45.0 * u[:, :, igst - 1:l - igst - 1]
            + 45.0 * u[:, :, igst + 1:l - igst + 1]
            - 9.0 * u[:, :, igst + 2:l - igst + 2]
            + u[:, :, igst + 3:l - igst + 3]) / (60.0 * dx)
    du = du.at[:, :, igst:l - igst].set(core)
    adu = jnp.zeros_like(u)
    adu = adu.at[:, 0, :].set(u[:, 1, :] * du[:, 0, :] + u[:, 0, :] * du[:, 1, :])
    adu = adu.at[:, 1, :].set(2.0 * du[:, 0, :] + u[:, 1, :] * du[:, 1, :])
    return -adu


if __name__ == "__main__":
    key = jax.random.PRNGKey(0)
    k1, k2 = jax.random.split(key)

    # Physical setup: 2 fields, 100 interior points + 2*igst ghosts = 120 lanes
    # (padded to 128 inside the wrapper).
    m, n, l = 8, 2, GRID_SIZE + 2 * IGST
    u = jax.random.normal(k1, (m, n, l), dtype=jnp.float32)

    out = centdif(u)                           # auto -> MXU stencil (L_pad=128)
    jax.block_until_ready(out)
    ref = _centdif_ref(u)
    assert out.shape == (m, n, l) and out.dtype == jnp.float32
    assert jnp.allclose(out, ref, atol=2e-3, rtol=1e-3), "MXU path mismatch"

    out_r = centdif(u, stencil="roll")         # VPU/XLU fallback path
    jax.block_until_ready(out_r)
    assert jnp.allclose(out_r, ref, atol=1e-3, rtol=1e-4), "roll path mismatch"

    # Extra (zero) channels + multi-step grid over the batch dim (2 tiles).
    m2, n2, l2 = 16, 3, 96
    u2 = jax.random.normal(k2, (m2, n2, l2), dtype=jnp.float32)
    out2 = centdif(u2)
    jax.block_until_ready(out2)
    ref2 = _centdif_ref(u2)
    assert jnp.allclose(out2, ref2, atol=2e-3, rtol=1e-3), "n=3 mismatch"

    print("KERNEL_OK")
</pallas_src>

<mosaic_0001>
module attributes {stable_mosaic.version = 11 : i64} {
  func.func @_centdif_mxu_kernel(%arg0: i32, %arg1: memref<128x128xf32, #tpu.memory_space<vmem>>, %arg2: memref<2x8x128xf32, #tpu.memory_space<vmem>>, %arg3: memref<2x8x128xf32, #tpu.memory_space<vmem>>) attributes {dimension_semantics = [#tpu.dimension_semantics<parallel>], iteration_bounds = array<i64: 1>, scalar_prefetch = 0 : i64, scratch_operands = 0 : i64, tpu.core_type = #tpu.core_type<tc>, window_params = [{pipeline_mode = #tpu.pipeline_mode<synchronous>, transform_indices = @transform_0, window_bounds = array<i64: 128, 128>}, {transform_indices = @transform_1, window_bounds = array<i64: 2, 8, 128>}, {transform_indices = @transform_2, window_bounds = array<i64: 2, 8, 128>}]} {
    %c0 = arith.constant 0 : index
    %c0_0 = arith.constant 0 : index
    %0 = vector.load %arg1[%c0, %c0_0] : memref<128x128xf32, #tpu.memory_space<vmem>>, vector<128x128xf32>
    %c0_1 = arith.constant 0 : index
    %c0_2 = arith.constant 0 : index
    %c0_3 = arith.constant 0 : index
    %1 = vector.load %arg2[%c0_1, %c0_2, %c0_3] : memref<2x8x128xf32, #tpu.memory_space<vmem>>, vector<1x8x128xf32>
    %2 = vector.shape_cast %1 : vector<1x8x128xf32> to vector<8x128xf32>
    %c1 = arith.constant 1 : index
    %c0_4 = arith.constant 0 : index
    %c0_5 = arith.constant 0 : index
    %3 = vector.load %arg2[%c1, %c0_4, %c0_5] : memref<2x8x128xf32, #tpu.memory_space<vmem>>, vector<1x8x128xf32>
    %4 = vector.shape_cast %3 : vector<1x8x128xf32> to vector<8x128xf32>
    %cst = arith.constant dense<0.000000e+00> : vector<8x128xf32>
    %5 = tpu.matmul %2, %0, %cst {dimension_numbers = #tpu.dot_dimension_numbers<[1], [0], [0], [1], [0, 0, 1, 1], [], []>, precision = #tpu.contract_precision<fp32>} : vector<8x128xf32>, vector<128x128xf32>, vector<8x128xf32> -> vector<8x128xf32>
    %cst_6 = arith.constant dense<0.000000e+00> : vector<8x128xf32>
    %6 = tpu.matmul %4, %0, %cst_6 {dimension_numbers = #tpu.dot_dimension_numbers<[1], [0], [0], [1], [0, 0, 1, 1], [], []>, precision = #tpu.contract_precision<fp32>} : vector<8x128xf32>, vector<128x128xf32>, vector<8x128xf32> -> vector<8x128xf32>
    %7 = arith.mulf %4, %5 : vector<8x128xf32>
    %8 = arith.mulf %2, %6 : vector<8x128xf32>
    %9 = arith.addf %7, %8 : vector<8x128xf32>
    %c0_7 = arith.constant 0 : index
    %c0_8 = arith.constant 0 : index
    %c0_9 = arith.constant 0 : index
    %10 = vector.load %arg3[%c0_7, %c0_8, %c0_9] : memref<2x8x128xf32, #tpu.memory_space<vmem>>, vector<1x8x128xf32>
    %11 = vector.shape_cast %10 : vector<1x8x128xf32> to vector<8x128xf32>
    %12 = vector.shape_cast %9 : vector<8x128xf32> to vector<1x8x128xf32>
    tpu.vector_store %arg3[%c0_7, %c0_8, %c0_9], %12 {strides = array<i32>} : memref<2x8x128xf32, #tpu.memory_space<vmem>>, vector<1x8x128xf32>,
    %cst_10 = arith.constant 2.000000e+00 : f32
    %13 = vector.broadcast %cst_10 : f32 to vector<8x128xf32>
    %14 = arith.mulf %13, %5 : vector<8x128xf32>
    %15 = arith.mulf %4, %6 : vector<8x128xf32>
    %16 = arith.addf %14, %15 : vector<8x128xf32>
    %c1_11 = arith.constant 1 : index
    %c0_12 = arith.constant 0 : index
    %c0_13 = arith.constant 0 : index
    %17 = vector.load %arg3[%c1_11, %c0_12, %c0_13] : memref<2x8x128xf32, #tpu.memory_space<vmem>>, vector<1x8x128xf32>
    %18 = vector.shape_cast %17 : vector<1x8x128xf32> to vector<8x128xf32>
    %19 = vector.shape_cast %16 : vector<8x128xf32> to vector<1x8x128xf32>
    tpu.vector_store %arg3[%c1_11, %c0_12, %c0_13], %19 {strides = array<i32>} : memref<2x8x128xf32, #tpu.memory_space<vmem>>, vector<1x8x128xf32>,
    return
  }
  func.func @transform_0(%arg0: i32) -> (i32, i32) {
    %c0_i32 = arith.constant 0 : i32
    %c0_i32_0 = arith.constant 0 : i32
    %c0_i32_1 = arith.constant 0 : i32
    return %c0_i32, %c0_i32_0 : i32, i32
  }
  func.func @transform_1(%arg0: i32) -> (i32, i32, i32) {
    %c0_i32 = arith.constant 0 : i32
    %c0_i32_0 = arith.constant 0 : i32
    %c0_i32_1 = arith.constant 0 : i32
    return %c0_i32, %arg0, %c0_i32_0 : i32, i32, i32
  }
  func.func @transform_2(%arg0: i32) -> (i32, i32, i32) {
    %c0_i32 = arith.constant 0 : i32
    %c0_i32_0 = arith.constant 0 : i32
    %c0_i32_1 = arith.constant 0 : i32
    return %c0_i32, %arg0, %c0_i32_0 : i32, i32, i32
  }
}

</mosaic_0001>

<bundles_post_ra>
// kernel: tpu_custom_call.1
= control target key start
LH: loop header
LB: loop body
LE: loop exit
PB: predicated region body
PF: predicated region fallthrough
CT: control target
= control target key end

     0   :  { %7 = vsyncpa [#allocation3], 0  ;;  %s2809_s0 = inlined_call_operand.hbm [shape: f32[128,128], index: 0, kind: input, shape index: {}]   ;;  %s2810_s1 = inlined_call_operand.hbm [shape: f32[2,8,128], index: 1, kind: input, shape index: {}]   ;;  %s2811_s2 = inlined_call_operand.hbm [shape: f32[2,8,128], index: 2, kind: output, shape index: {}]  }
   0x1   :  { %8 = vsyncpa [#allocation6], 0 }
   0x2   :  { %9 = vsyncpa [#allocation4], 0  ;;  %s2380_s9 = smov [#allocation2]   ;;  %s2308_s13 = scalar_lea.hbm %s2809_s0, 2048 }
   0x3   :  { %s15_s10 = sshll.u32 %s2380_s9, 4  ;;  %p2309_p0 = scmp.ne.s32.totalorder %s2809_s0, %s2308_s13  ;;  %s16_s10 = int_to_ptr.vmem [resolvable:$true] %s15_s10 }
   0x4   :  { %p2312_p1 = scmp.lt.u32.totalorder %s2308_s13, %s2809_s0 }
   0x6   :  { %p2314_p2 = pnand %p2312_p1, %p2309_p0 }
   0x8   :  { %2317 = shalt.err (!%p2314_p2)
}
   0x9   :  { %s2318_s18 = scalar_lea.vmem %s16_s10, 2048  ;;  %p2323_p4 = scmp.lt.s32.totalorder %s16_s10, %s16_s10 }
   0xa   :  { %p2319_p3 = scmp.ne.s32.totalorder %s16_s10, %s2318_s18  ;;  %p2324_p5 = scmp.lt.s32.totalorder %s2318_s18, %s2318_s18 }
   0xc   :  { %p2325_p6 = por %p2324_p5, %p2323_p4 }
   0xe   :  { %p2326_p7 = pnand %p2325_p6, %p2319_p3 }
  0x10   :  { %2329 = shalt.err (!%p2326_p7)
}
  0x11   :  { %s2381_s19 = smov 128   ;;  %s2382_s20 = smov 8  }
  0x12   :  { %21 = dma.hbm_to_vmem [thread:$0]  %s2809_s0, 2048, %s16_s10, [#allocation3], %s2381_s19, %s2381_s19, %s2382_s20  }
  0x13   :  { %s2383_s23 = smov [#allocation5]   ;;  %s2330_s27 = scalar_lea.hbm %s2810_s1, 256 }
  0x14   :  { %s27_s24 = sshll.u32 %s2383_s23, 4  ;;  %p2331_p8 = scmp.ne.s32.totalorder %s2810_s1, %s2330_s27  ;;  %s28_s24 = int_to_ptr.vmem [resolvable:$true] %s27_s24 }
  0x15   :  { %p2334_p9 = scmp.lt.u32.totalorder %s2330_s27, %s2810_s1 }
  0x17   :  { %p2336_p10 = pnand %p2334_p9, %p2331_p8 }
  0x19   :  { %2339 = shalt.err (!%p2336_p10)
}
  0x1a   :  { %s2340_s4 = scalar_lea.vmem %s28_s24, 256  ;;  %p2345_p12 = scmp.lt.s32.totalorder %s28_s24, %s28_s24 }
  0x1b   :  { %p2341_p11 = scmp.ne.s32.totalorder %s28_s24, %s2340_s4  ;;  %p2346_p13 = scmp.lt.s32.totalorder %s2340_s4, %s2340_s4 }
  0x1d   :  { %p2347_p0 = por %p2346_p13, %p2345_p12 }
  0x1f   :  { %p2348_p1 = pnand %p2347_p0, %p2341_p11 }
  0x21   :  { %2351 = shalt.err (!%p2348_p1)
}
  0x22   :  { %33 = dma.hbm_to_vmem [thread:$0]  %s2810_s1, 256, %s28_s24, [#allocation6], %s2381_s19, %s2381_s19, %s2382_s20  }
  0x23   :  { %2374 = dma.done.wait [#allocation3], 2048  }
  0x24   :  { %2375 = vsyncadd [#allocation3], 4294965248 }
  0x25   :  { %2376 = dma.done.wait [#allocation6], 256  }
  0x26   :  { %2377 = vsyncadd [#allocation6], 4294967040  ;;  %v2384_v0 = vmov 0.0|0.0   ;;  %vm2385_vm0 = vmmov 0   ;;  %v2386_v1 = vmov 0.0   ;;  %v40_v2 = vld [vmem:[#allocation2] sm:$0xff] }
  0x27   :  { %1992 = vmatprep.subr.bf16.mxu0 %v2384_v0  ;;  %2136 = vmatprep.subr.bf16.mxu1 %v2384_v0  ;;  %v41_v3 = vld [vmem:[#allocation2 + $0x8] sm:$0xff]  ;;  %v42_v4 = vld [vmem:[#allocation2 + $0x10] sm:$0xff]  ;;  %v60_v5 = vand.u32 4294901760, %v40_v2  ;;  %v43_v7 = vld [vmem:[#allocation2 + $0x18] sm:$0xff]  ;;  %s2387_s1 = smov [#allocation7]  }
  0x28   :  { %1604 = vmatprep.mubr.msk.f32.mxu0 %vm2385_vm0, %v2386_v1  ;;  %1814 = vmatprep.mubr.msk.f32.mxu1 %vm2385_vm0, %v2386_v1  ;;  %v63_v6 = vand.u32 4294901760, %v41_v3  ;;  %v66_v8 = vand.u32 4294901760, %v42_v4  ;;  %v69_v9 = vand.u32 4294901760, %v43_v7  ;;  %v44_v10 = vld [vmem:[#allocation2 + $0x20] sm:$0xff]  ;;  %v2439_v11 = vld [vmem:[#allocation2 + $0x28] sm:$0xff]  ;;  %v2450_v16 = vld [vmem:[#allocation2 + $0x30] sm:$0xff] }
  0x29   :  { %v72_v14 = vand.u32 4294901760, %v44_v10  ;;  %v75_v15 = vand.u32 4294901760, %v2439_v11  ;;  %v2452_v17 = vld [vmem:[#allocation2 + $0x38] sm:$0xff]  ;;  %v2454_v18 = vld [vmem:[#allocation5] sm:$0xff]  ;;  %v78_v20 = vand.u32 4294901760, %v2450_v16  ;;  %v49_v23 = vld [vmem:[#allocation2 + $0x48] sm:$0xff]  ;;  %v2473_v35 = vsub.f32 %v40_v2, %v60_v5 }
  0x2a   :  { %v2441_v12 = vpack.c.bf16 %v63_v6, %v60_v5  ;;  %v2445_v13 = vpack.c.bf16 %v69_v9, %v66_v8  ;;  %v81_v21 = vand.u32 4294901760, %v2452_v17  ;;  %v48_v22 = vld [vmem:[#allocation2 + $0x40] sm:$0xff]  ;;  %v2465_v24 = vand.u32 4294901760, %v2454_v18  ;;  %v2467_v25 = vld [vmem:[#allocation5 + $0x8] sm:$0xff]  ;;  %v50_v27 = vld [vmem:[#allocation2 + $0x50] sm:$0xff]  ;;  %s1355_s6 = sshll.u32 %s2387_s1, 4  ;;  %s1356_s6 = int_to_ptr.vmem [resolvable:$true] %s1355_s6 }
  0x2b   :  { %v2458_v19 = vpack.c.bf16 %v75_v15, %v72_v14  ;;  %v84_v26 = vand.u32 4294901760, %v48_v22  ;;  %v51_v28 = vld [vmem:[#allocation2 + $0x58] sm:$0xff]  ;;  %v52_v29 = vld [vmem:[#allocation2 + $0x60] sm:$0xff]  ;;  %v87_v31 = vand.u32 4294901760, %v49_v23  ;;  %v53_v32 = vld [vmem:[#allocation2 + $0x68] sm:$0xff]  ;;  %v2475_v36 = vsub.f32 %v41_v3, %v63_v6  ;;  %s2352_s7 = scalar_lea.vmem %s1356_s6, 256  ;;  %p2357_p3 = scmp.lt.s32.totalorder %s1356_s6, %s1356_s6 }
  0x2c   :  { %1994 = vmatpush3.bf16.msra.mxu0 %v2441_v12  ;;  %2138 = vmatpush3.bf16.msra.mxu1 %v2441_v12  ;;  %v2471_v30 = vpack.c.bf16 %v81_v21, %v78_v20  ;;  %v54_v33 = vld [vmem:[#allocation2 + $0x70] sm:$0xff]  ;;  %v55_v34 = vld [vmem:[#allocation2 + $0x78] sm:$0xff]  ;;  %v2481_v37 = vsub.f32 %v2454_v18, %v2465_v24  ;;  %v2484_v38 = vand.u32 4294901760, %v2467_v25  ;;  %v90_v39 = vand.u32 4294901760, %v50_v27  ;;  %p2353_p2 = scmp.ne.s32.totalorder %s1356_s6, %s2352_s7  ;;  %p2358_p4 = scmp.lt.s32.totalorder %s2352_s7, %s2352_s7 }
  0x2d   :  { %1995 = vmatprep.subr.bf16.mxu0 %v2384_v0  ;;  %2139 = vmatprep.subr.bf16.mxu1 %v2384_v0  ;;  %v93_v40 = vand.u32 4294901760, %v51_v28  ;;  %v96_v41 = vand.u32 4294901760, %v52_v29  ;;  %v99_v42 = vand.u32 4294901760, %v53_v32  ;;  %v102_v43 = vand.u32 4294901760, %v54_v33 }
  0x2e   :  { %v105_v44 = vand.u32 4294901760, %v55_v34  ;;  %v2488_v45 = vpack.c.bf16 %v87_v31, %v84_v26  ;;  %v153_v46 = vand.u32 4294901760, %v2473_v35  ;;  %v160_v47 = vand.u32 4294901760, %v2475_v36  ;;  %p2359_p5 = por %p2358_p4, %p2357_p3 }
  0x2f   :  { %v2492_v48 = vsub.f32 %v42_v4, %v66_v8  ;;  %v2813_v49 = vand.u32 4294901760, %v2481_v37  ;;  %v2499_v50 = vsub.f32 %v2467_v25, %v2484_v38  ;;  %v2501_v51 = vsub.f32 %v43_v7, %v69_v9 }
  0x30   :  { %1997 = vmatpush3.bf16.msra.mxu0 %v2445_v13  ;;  %2141 = vmatpush3.bf16.msra.mxu1 %v2445_v13  ;;  %v2503_v52 = vsub.f32 %v44_v10, %v72_v14  ;;  %v2505_v53 = vpack.c.bf16 %v93_v40, %v90_v39  ;;  %v2507_v54 = vpack.c.bf16 %v99_v42, %v96_v41  ;;  %p2360_p6 = pnand %p2359_p5, %p2353_p2 }
  0x31   :  { %1998 = vmatprep.subr.bf16.mxu0 %v2384_v0  ;;  %2142 = vmatprep.subr.bf16.mxu1 %v2384_v0  ;;  %v2509_v55 = vpack.c.bf16 %v105_v44, %v102_v43  ;;  %v154_v56 = vsub.f32 %v2473_v35, %v153_v46  ;;  %v161_v57 = vsub.f32 %v2475_v36, %v160_v47  ;;  %v167_v58 = vand.u32 4294901760, %v2492_v48 }
  0x32   :  { %v2517_v59 = vsub.f32 %v2439_v11, %v75_v15  ;;  %v143_v60 = vsub.f32 %v2481_v37, %v2813_v49  ;;  %v2812_v61 = vand.u32 4294901760, %v2499_v50  ;;  %v174_v62 = vand.u32 4294901760, %v2501_v51 }
  0x33   :  { %v181_v63 = vand.u32 4294901760, %v2503_v52  ;;  %v2528_v2 = vsub.f32 %v2450_v16, %v78_v20  ;;  %v2531_v3 = vsub.f32 %v2452_v17, %v81_v21  ;;  %v2533_v4 = vsub.f32 %v48_v22, %v84_v26 }
  0x34   :  { %2000 = vmatpush3.bf16.msra.mxu0 %v2458_v19  ;;  %2144 = vmatpush3.bf16.msra.mxu1 %v2458_v19  ;;  %v2535_v5 = vsub.f32 %v49_v23, %v87_v31  ;;  %v2537_v6 = vsub.f32 %v50_v27, %v90_v39  ;;  %v2539_v7 = vsub.f32 %v51_v28, %v93_v40  ;;  %v188_v11 = vand.u32 4294901760, %v2517_v59 }
  0x35   :  { %2001 = vmatprep.subr.bf16.mxu0 %v2384_v0  ;;  %2145 = vmatprep.subr.bf16.mxu1 %v2384_v0  ;;  %v2541_v8 = vsub.f32 %v52_v29, %v96_v41  ;;  %v2543_v9 = vsub.f32 %v53_v32, %v99_v42  ;;  %v168_v10 = vsub.f32 %v2492_v48, %v167_v58  ;;  %v155_v16 = vand.u32 4294901760, %v154_v56 }
  0x36   :  { %v2549_v14 = vsub.f32 %v54_v33, %v102_v43  ;;  %v2551_v15 = vsub.f32 %v55_v34, %v105_v44  ;;  %v162_v17 = vand.u32 4294901760, %v161_v57  ;;  %v784_v20 = vsub.f32 %v2499_v50, %v2812_v61 }
  0x37   :  { %v175_v21 = vsub.f32 %v2501_v51, %v174_v62  ;;  %v195_v22 = vand.u32 4294901760, %v2528_v2  ;;  %v202_v23 = vand.u32 4294901760, %v2531_v3  ;;  %v209_v26 = vand.u32 4294901760, %v2533_v4 }
  0x38   :  { %2003 = vmatpush3.bf16.msra.mxu0 %v2471_v30  ;;  %2147 = vmatpush3.bf16.msra.mxu1 %v2471_v30  ;;  %v216_v27 = vand.u32 4294901760, %v2535_v5  ;;  %v223_v28 = vand.u32 4294901760, %v2537_v6  ;;  %v230_v29 = vand.u32 4294901760, %v2539_v7  ;;  %v237_v31 = vand.u32 4294901760, %v2541_v8 }
  0x39   :  { %2004 = vmatprep.subr.bf16.mxu0 %v2384_v0  ;;  %2148 = vmatprep.subr.bf16.mxu1 %v2384_v0  ;;  %v2814_v32 = vand.u32 4294901760, %v2543_v9  ;;  %v251_v33 = vand.u32 4294901760, %v2549_v14  ;;  %v2815_v34 = vand.u32 4294901760, %v2551_v15  ;;  %v2571_v39 = vpack.c.bf16 %v160_v47, %v153_v46 }
  0x3a   :  { %v2573_v40 = vpack.c.bf16 %v174_v62, %v167_v58  ;;  %v2577_v41 = vpack.c.bf16 %v188_v11, %v181_v63  ;;  %v2579_v42 = vpack.c.bf16 %v202_v23, %v195_v22  ;;  %v2581_v43 = vpack.c.bf16 %v216_v27, %v209_v26 }
  0x3b   :  { %v2583_v44 = vpack.c.bf16 %v230_v29, %v223_v28  ;;  %v2587_v56 = vpack.c.bf16 %v2814_v32, %v237_v31  ;;  %v2593_v46 = vpack.c.bf16 %v2815_v34, %v251_v33  ;;  %v144_v47 = vand.u32 4294901760, %v143_v60 }
  0x3c   :  { %2006 = vmatpush3.bf16.msra.mxu0 %v2488_v45  ;;  %2150 = vmatpush3.bf16.msra.mxu1 %v2488_v45  ;;  %v785_v57 = vand.u32 4294901760, %v784_v20  ;;  %v182_v58 = vsub.f32 %v2503_v52, %v181_v63  ;;  %v189_v62 = vsub.f32 %v2517_v59, %v188_v11  ;;  %v2017_v61 = vpack.c.bf16 %v162_v17, %v155_v16 }
  0x3d   :  { %2007 = vmatprep.subr.bf16.mxu0 %v2384_v0  ;;  %2151 = vmatprep.subr.bf16.mxu1 %v2384_v0  ;;  %v169_v49 = vand.u32 4294901760, %v168_v10  ;;  %v176_v32 = vand.u32 4294901760, %v175_v21  ;;  %v196_v11 = vsub.f32 %v2528_v2, %v195_v22  ;;  %v203_v20 = vsub.f32 %v2531_v3, %v202_v23 }
  0x3e   :  { %v183_v34 = vand.u32 4294901760, %v182_v58  ;;  %v190_v60 = vand.u32 4294901760, %v189_v62  ;;  %v217_v17 = vsub.f32 %v2535_v5, %v216_v27  ;;  %v224_v21 = vsub.f32 %v2537_v6, %v223_v28 }
  0x3f   :  { %v2020_v63 = vpack.c.bf16 %v176_v32, %v169_v49  ;;  %v197_v16 = vand.u32 4294901760, %v196_v11  ;;  %v210_v49 = vsub.f32 %v2533_v4, %v209_v26  ;;  %v238_v26 = vsub.f32 %v2541_v8, %v237_v31 }
  0x40   :  { %2009 = vmatpush3.bf16.msra.mxu0 %v2505_v53  ;;  %2153 = vmatpush3.bf16.msra.mxu1 %v2505_v53  ;;  %v2023_v10 = vpack.c.bf16 %v190_v60, %v183_v34  ;;  %v218_v32 = vand.u32 4294901760, %v217_v17  ;;  %v231_v34 = vsub.f32 %v2539_v7, %v230_v29  ;;  %v2816_v28 = vand.u32 4294901760, %v2543_v9 }
  0x41   :  { %2010 = vmatprep.subr.bf16.mxu0 %v2384_v0  ;;  %2154 = vmatprep.subr.bf16.mxu1 %v2384_v0  ;;  %v211_v23 = vand.u32 4294901760, %v210_v49  ;;  %v239_v29 = vand.u32 4294901760, %v238_v26  ;;  %v252_v31 = vsub.f32 %v2549_v14, %v251_v33  ;;  %v2044_v49 = vpack.c.bf16 %v2501_v51, %v2492_v48 }
  0x42   :  { %v245_v58 = vsub.f32 %v2543_v9, %v2816_v28  ;;  %v2053_v48 = vpack.c.bf16 %v2535_v5, %v2533_v4  ;;  %v2056_v51 = vpack.c.bf16 %v2539_v7, %v2537_v6 }
  0x43   :  { %v2029_v27 = vpack.c.bf16 %v218_v32, %v211_v23 }
  0x44   :  { %2012 = vmatpush3.bf16.msra.mxu0 %v2507_v54  ;;  %2156 = vmatpush3.bf16.msra.mxu1 %v2507_v54  ;;  %v246_v60 = vand.u32 4294901760, %v245_v58 }
  0x45   :  { %2013 = vmatprep.subr.bf16.mxu0 %v2384_v0  ;;  %2157 = vmatprep.subr.bf16.mxu1 %v2384_v0 }
  0x48   :  { %2015 = vmatpush3.bf16.msra.mxu0 %v2509_v55  ;;  %2159 = vmatpush3.bf16.msra.mxu1 %v2509_v55 }
  0x49   :  { %2016 = vmatprep.subr.bf16.mxu0 %v2384_v0  ;;  %2160 = vmatprep.subr.bf16.mxu1 %v2384_v0 }
  0x4b   :  { %1605 = vmatmul.mubr.f32.vlgmr.msra.gmra.mrb[0].mxu0 %v144_v47  ;;  %1815 = vmatmul.mubr.f32.vlgmr.msra.gmra.mrb[0].mxu1 %v785_v57  ;;  %v225_v47 = vand.u32 4294901760, %v224_v21  ;;  %v232_v57 = vand.u32 4294901760, %v231_v34 }
  0x4c   :  { %2018 = vmatpush3.bf16.msra.mxu0 %v2017_v61  ;;  %2162 = vmatpush3.bf16.msra.mxu1 %v2017_v61  ;;  %v204_v61 = vand.u32 4294901760, %v203_v20  ;;  %v2035_v20 = vpack.c.bf16 %v246_v60, %v239_v29 }
  0x4d   :  { %2019 = vmatprep.subr.bf16.mxu0 %v2384_v0  ;;  %2163 = vmatprep.subr.bf16.mxu1 %v2384_v0  ;;  %v2032_v62 = vpack.c.bf16 %v232_v57, %v225_v47 }
  0x4e   :  { %1639 = vmatprep.mubr.msk.f32.mxu0 %vm2385_vm0, %v2386_v1  ;;  %1849 = vmatprep.mubr.msk.f32.mxu1 %vm2385_vm0, %v2386_v1  ;;  %v2026_v22 = vpack.c.bf16 %v204_v61, %v197_v16  ;;  %v2041_v61 = vpack.c.bf16 %v2475_v36, %v2473_v35  ;;  %v2047_v35 = vpack.c.bf16 %v2517_v59, %v2503_v52 }
  0x4f   :  { %v2050_v36 = vpack.c.bf16 %v2531_v3, %v2528_v2  ;;  %v2059_v52 = vpack.c.bf16 %v2543_v9, %v2541_v8  ;;  %v2062_v59 = vpack.c.bf16 %v2551_v15, %v2549_v14  ;;  %v2818_v2 = vand.u32 4294901760, %v2481_v37 }
  0x50   :  { %2021 = vmatpush3.bf16.msra.mxu0 %v2020_v63  ;;  %2165 = vmatpush3.bf16.msra.mxu1 %v2020_v63  ;;  %v2817_v63 = vand.u32 4294901760, %v2551_v15  ;;  %v2819_v3 = vand.u32 4294901760, %v2499_v50 }
  0x51   :  { %2022 = vmatprep.subr.bf16.mxu0 %v2384_v0  ;;  %2166 = vmatprep.subr.bf16.mxu1 %v2384_v0 }
  0x52   :  { %v259_v11 = vsub.f32 %v2551_v15, %v2817_v63 }
  0x54   :  { %2024 = vmatpush3.bf16.msra.mxu0 %v2023_v10  ;;  %2168 = vmatpush3.bf16.msra.mxu1 %v2023_v10  ;;  %v253_v10 = vand.u32 4294901760, %v252_v31  ;;  %v260_v16 = vand.u32 4294901760, %v259_v11 }
  0x55   :  { %2025 = vmatprep.subr.bf16.mxu0 %v2384_v0  ;;  %2169 = vmatprep.subr.bf16.mxu1 %v2384_v0 }
  0x56   :  { %v2038_v33 = vpack.c.bf16 %v260_v16, %v253_v10 }
  0x58   :  { %2027 = vmatpush3.bf16.msra.mxu0 %v2026_v22  ;;  %2171 = vmatpush3.bf16.msra.mxu1 %v2026_v22 }
  0x59   :  { %2028 = vmatprep.subr.bf16.mxu0 %v2384_v0  ;;  %2172 = vmatprep.subr.bf16.mxu1 %v2384_v0 }
  0x5c   :  { %2030 = vmatpush3.bf16.msra.mxu0 %v2029_v27  ;;  %2174 = vmatpush3.bf16.msra.mxu1 %v2029_v27 }
  0x5d   :  { %2031 = vmatprep.subr.bf16.mxu0 %v2384_v0  ;;  %2175 = vmatprep.subr.bf16.mxu1 %v2384_v0 }
  0x60   :  { %2033 = vmatpush3.bf16.msra.mxu0 %v2032_v62  ;;  %2177 = vmatpush3.bf16.msra.mxu1 %v2032_v62 }
  0x61   :  { %2034 = vmatprep.subr.bf16.mxu0 %v2384_v0  ;;  %2178 = vmatprep.subr.bf16.mxu1 %v2384_v0 }
  0x64   :  { %2036 = vmatpush3.bf16.msra.mxu0 %v2035_v20  ;;  %2180 = vmatpush3.bf16.msra.mxu1 %v2035_v20 }
  0x65   :  { %2037 = vmatprep.subr.bf16.mxu0 %v2384_v0  ;;  %2181 = vmatprep.subr.bf16.mxu1 %v2384_v0 }
  0x68   :  { %2039 = vmatpush3.bf16.msra.mxu0 %v2038_v33  ;;  %2183 = vmatpush3.bf16.msra.mxu1 %v2038_v33 }
  0x69   :  { %2040 = vmatprep.subr.bf16.mxu0 %v2384_v0  ;;  %2184 = vmatprep.subr.bf16.mxu1 %v2384_v0 }
  0x6b   :  { %1640 = vmatmul.mubr.f32.vlgmr.msra.gmra.mrb[0].mxu0 %v2465_v24  ;;  %1850 = vmatmul.mubr.f32.vlgmr.msra.gmra.mrb[0].mxu1 %v2484_v38 }
  0x6c   :  { %2042 = vmatpush3.bf16.msra.mxu0 %v2041_v61  ;;  %2186 = vmatpush3.bf16.msra.mxu1 %v2041_v61 }
  0x6d   :  { %2043 = vmatprep.subr.bf16.mxu0 %v2384_v0  ;;  %2187 = vmatprep.subr.bf16.mxu1 %v2384_v0 }
  0x6e   :  { %1674 = vmatprep.mubr.msk.f32.mxu0 %vm2385_vm0, %v2386_v1  ;;  %1884 = vmatprep.mubr.msk.f32.mxu1 %vm2385_vm0, %v2386_v1 }
  0x70   :  { %2045 = vmatpush3.bf16.msra.mxu0 %v2044_v49  ;;  %2189 = vmatpush3.bf16.msra.mxu1 %v2044_v49 }
  0x71   :  { %2046 = vmatprep.subr.bf16.mxu0 %v2384_v0  ;;  %2190 = vmatprep.subr.bf16.mxu1 %v2384_v0 }
  0x74   :  { %2048 = vmatpush3.bf16.msra.mxu0 %v2047_v35  ;;  %2192 = vmatpush3.bf16.msra.mxu1 %v2047_v35 }
  0x75   :  { %2049 = vmatprep.subr.bf16.mxu0 %v2384_v0  ;;  %2193 = vmatprep.subr.bf16.mxu1 %v2384_v0 }
  0x78   :  { %2051 = vmatpush3.bf16.msra.mxu0 %v2050_v36  ;;  %2195 = vmatpush3.bf16.msra.mxu1 %v2050_v36 }
  0x79   :  { %2052 = vmatprep.subr.bf16.mxu0 %v2384_v0  ;;  %2196 = vmatprep.subr.bf16.mxu1 %v2384_v0 }
  0x7c   :  { %2054 = vmatpush3.bf16.msra.mxu0 %v2053_v48  ;;  %2198 = vmatpush3.bf16.msra.mxu1 %v2053_v48 }
  0x7d   :  { %2055 = vmatprep.subr.bf16.mxu0 %v2384_v0  ;;  %2199 = vmatprep.subr.bf16.mxu1 %v2384_v0 }
  0x80   :  { %2057 = vmatpush3.bf16.msra.mxu0 %v2056_v51  ;;  %2201 = vmatpush3.bf16.msra.mxu1 %v2056_v51 }
  0x81   :  { %2058 = vmatprep.subr.bf16.mxu0 %v2384_v0  ;;  %2202 = vmatprep.subr.bf16.mxu1 %v2384_v0 }
  0x84   :  { %2060 = vmatpush3.bf16.msra.mxu0 %v2059_v52  ;;  %2204 = vmatpush3.bf16.msra.mxu1 %v2059_v52 }
  0x85   :  { %2061 = vmatprep.subr.bf16.mxu0 %v2384_v0  ;;  %2205 = vmatprep.subr.bf16.mxu1 %v2384_v0 }
  0x88   :  { %2063 = vmatpush3.bf16.msra.mxu0 %v2062_v59  ;;  %2207 = vmatpush3.bf16.msra.mxu1 %v2062_v59 }
  0x89   :  { %2064 = vmatprep.subr.bf16.mxu0 %v2384_v0  ;;  %2208 = vmatprep.subr.bf16.mxu1 %v2384_v0 }
  0x8b   :  { %1675 = vmatmul.mubr.f32.vlgmr.msra.gmra.mrb[0].mxu0 %v2481_v37  ;;  %1885 = vmatmul.mubr.f32.vlgmr.msra.gmra.mrb[0].mxu1 %v2499_v50 }
  0x8c   :  { %2066 = vmatpush3.bf16.msra.mxu0 %v2441_v12  ;;  %2210 = vmatpush3.bf16.msra.mxu1 %v2441_v12 }
  0x8d   :  { %2067 = vmatprep.subr.bf16.mxu0 %v2384_v0  ;;  %2211 = vmatprep.subr.bf16.mxu1 %v2384_v0 }
  0x8e   :  { %1709 = vmatprep.mubr.msk.f32.mxu0 %vm2385_vm0, %v2386_v1  ;;  %1919 = vmatprep.mubr.msk.f32.mxu1 %vm2385_vm0, %v2386_v1 }
  0x90   :  { %2069 = vmatpush3.bf16.msra.mxu0 %v2445_v13  ;;  %2213 = vmatpush3.bf16.msra.mxu1 %v2445_v13 }
  0x91   :  { %2070 = vmatprep.subr.bf16.mxu0 %v2384_v0  ;;  %2214 = vmatprep.subr.bf16.mxu1 %v2384_v0 }
  0x94   :  { %2072 = vmatpush3.bf16.msra.mxu0 %v2458_v19  ;;  %2216 = vmatpush3.bf16.msra.mxu1 %v2458_v19 }
  0x95   :  { %2073 = vmatprep.subr.bf16.mxu0 %v2384_v0  ;;  %2217 = vmatprep.subr.bf16.mxu1 %v2384_v0 }
  0x98   :  { %2075 = vmatpush3.bf16.msra.mxu0 %v2471_v30  ;;  %2219 = vmatpush3.bf16.msra.mxu1 %v2471_v30 }
  0x99   :  { %2076 = vmatprep.subr.bf16.mxu0 %v2384_v0  ;;  %2220 = vmatprep.subr.bf16.mxu1 %v2384_v0 }
  0x9c   :  { %2078 = vmatpush3.bf16.msra.mxu0 %v2488_v45  ;;  %2222 = vmatpush3.bf16.msra.mxu1 %v2488_v45 }
  0x9d   :  { %2079 = vmatprep.subr.bf16.mxu0 %v2384_v0  ;;  %2223 = vmatprep.subr.bf16.mxu1 %v2384_v0 }
  0xa0   :  { %2081 = vmatpush3.bf16.msra.mxu0 %v2505_v53  ;;  %2225 = vmatpush3.bf16.msra.mxu1 %v2505_v53 }
  0xa1   :  { %2082 = vmatprep.subr.bf16.mxu0 %v2384_v0  ;;  %2226 = vmatprep.subr.bf16.mxu1 %v2384_v0 }
  0xa4   :  { %2084 = vmatpush3.bf16.msra.mxu0 %v2507_v54  ;;  %2228 = vmatpush3.bf16.msra.mxu1 %v2507_v54 }
  0xa5   :  { %2085 = vmatprep.subr.bf16.mxu0 %v2384_v0  ;;  %2229 = vmatprep.subr.bf16.mxu1 %v2384_v0 }
  0xa8   :  { %2087 = vmatpush3.bf16.msra.mxu0 %v2509_v55  ;;  %2231 = vmatpush3.bf16.msra.mxu1 %v2509_v55 }
  0xa9   :  { %2088 = vmatprep.subr.bf16.mxu0 %v2384_v0  ;;  %2232 = vmatprep.subr.bf16.mxu1 %v2384_v0 }
  0xab   :  { %1710 = vmatmul.mubr.f32.vlgmr.msra.gmra.mrb[0].mxu0 %v2818_v2  ;;  %1920 = vmatmul.mubr.f32.vlgmr.msra.gmra.mrb[0].mxu1 %v2819_v3 }
  0xac   :  { %2090 = vmatpush3.bf16.msra.mxu0 %v2571_v39  ;;  %2234 = vmatpush3.bf16.msra.mxu1 %v2571_v39 }
  0xad   :  { %2091 = vmatprep.subr.bf16.mxu0 %v2384_v0  ;;  %2235 = vmatprep.subr.bf16.mxu1 %v2384_v0 }
  0xae   :  { %1744 = vmatprep.mubr.msk.f32.mxu0 %vm2385_vm0, %v2386_v1  ;;  %1954 = vmatprep.mubr.msk.f32.mxu1 %vm2385_vm0, %v2386_v1 }
  0xb0   :  { %2093 = vmatpush3.bf16.msra.mxu0 %v2573_v40  ;;  %2237 = vmatpush3.bf16.msra.mxu1 %v2573_v40 }
  0xb1   :  { %2094 = vmatprep.subr.bf16.mxu0 %v2384_v0  ;;  %2238 = vmatprep.subr.bf16.mxu1 %v2384_v0 }
  0xb4   :  { %2096 = vmatpush3.bf16.msra.mxu0 %v2577_v41  ;;  %2240 = vmatpush3.bf16.msra.mxu1 %v2577_v41 }
  0xb5   :  { %2097 = vmatprep.subr.bf16.mxu0 %v2384_v0  ;;  %2241 = vmatprep.subr.bf16.mxu1 %v2384_v0 }
  0xb8   :  { %2099 = vmatpush3.bf16.msra.mxu0 %v2579_v42  ;;  %2243 = vmatpush3.bf16.msra.mxu1 %v2579_v42 }
  0xb9   :  { %2100 = vmatprep.subr.bf16.mxu0 %v2384_v0  ;;  %2244 = vmatprep.subr.bf16.mxu1 %v2384_v0 }
  0xbc   :  { %2102 = vmatpush3.bf16.msra.mxu0 %v2581_v43  ;;  %2246 = vmatpush3.bf16.msra.mxu1 %v2581_v43 }
  0xbd   :  { %2103 = vmatprep.subr.bf16.mxu0 %v2384_v0  ;;  %2247 = vmatprep.subr.bf16.mxu1 %v2384_v0 }
  0xc0   :  { %2105 = vmatpush3.bf16.msra.mxu0 %v2583_v44  ;;  %2249 = vmatpush3.bf16.msra.mxu1 %v2583_v44 }
  0xc1   :  { %2106 = vmatprep.subr.bf16.mxu0 %v2384_v0  ;;  %2250 = vmatprep.subr.bf16.mxu1 %v2384_v0 }
  0xc4   :  { %2108 = vmatpush3.bf16.msra.mxu0 %v2587_v56  ;;  %2252 = vmatpush3.bf16.msra.mxu1 %v2587_v56 }
  0xc5   :  { %2109 = vmatprep.subr.bf16.mxu0 %v2384_v0  ;;  %2253 = vmatprep.subr.bf16.mxu1 %v2384_v0 }
  0xc8   :  { %2111 = vmatpush3.bf16.msra.mxu0 %v2593_v46  ;;  %2255 = vmatpush3.bf16.msra.mxu1 %v2593_v46 }
  0xc9   :  { %2112 = vmatprep.subr.bf16.mxu0 %v2384_v0  ;;  %2256 = vmatprep.subr.bf16.mxu1 %v2384_v0 }
  0xcb   :  { %1745 = vmatmul.mubr.f32.vlgmr.msra.gmra.mrb[0].mxu0 %v2465_v24  ;;  %1955 = vmatmul.mubr.f32.vlgmr.msra.gmra.mrb[0].mxu1 %v2484_v38 }
  0xcc   :  { %2114 = vmatpush3.bf16.msra.mxu0 %v2441_v12  ;;  %2258 = vmatpush3.bf16.msra.mxu1 %v2441_v12 }
  0xcd   :  { %2115 = vmatprep.subr.bf16.mxu0 %v2384_v0  ;;  %2259 = vmatprep.subr.bf16.mxu1 %v2384_v0 }
  0xce   :  { %1779 = vmatprep.mubr.msk.f32.mxu0 %vm2385_vm0, %v2386_v1  ;;  %1989 = vmatprep.mubr.msk.f32.mxu1 %vm2385_vm0, %v2386_v1 }
  0xd0   :  { %2117 = vmatpush3.bf16.msra.mxu0 %v2445_v13  ;;  %2261 = vmatpush3.bf16.msra.mxu1 %v2445_v13 }
  0xd1   :  { %2118 = vmatprep.subr.bf16.mxu0 %v2384_v0  ;;  %2262 = vmatprep.subr.bf16.mxu1 %v2384_v0 }
  0xd4   :  { %2120 = vmatpush3.bf16.msra.mxu0 %v2458_v19  ;;  %2264 = vmatpush3.bf16.msra.mxu1 %v2458_v19 }
  0xd5   :  { %2121 = vmatprep.subr.bf16.mxu0 %v2384_v0  ;;  %2265 = vmatprep.subr.bf16.mxu1 %v2384_v0 }
  0xd8   :  { %2123 = vmatpush3.bf16.msra.mxu0 %v2471_v30  ;;  %2267 = vmatpush3.bf16.msra.mxu1 %v2471_v30 }
  0xd9   :  { %2124 = vmatprep.subr.bf16.mxu0 %v2384_v0  ;;  %2268 = vmatprep.subr.bf16.mxu1 %v2384_v0 }
  0xdc   :  { %2126 = vmatpush3.bf16.msra.mxu0 %v2488_v45  ;;  %2270 = vmatpush3.bf16.msra.mxu1 %v2488_v45 }
  0xdd   :  { %2127 = vmatprep.subr.bf16.mxu0 %v2384_v0  ;;  %2271 = vmatprep.subr.bf16.mxu1 %v2384_v0 }
  0xe0   :  { %2129 = vmatpush3.bf16.msra.mxu0 %v2505_v53  ;;  %2273 = vmatpush3.bf16.msra.mxu1 %v2505_v53 }
  0xe1   :  { %2130 = vmatprep.subr.bf16.mxu0 %v2384_v0  ;;  %2274 = vmatprep.subr.bf16.mxu1 %v2384_v0 }
  0xe4   :  { %2132 = vmatpush3.bf16.msra.mxu0 %v2507_v54  ;;  %2276 = vmatpush3.bf16.msra.mxu1 %v2507_v54 }
  0xe5   :  { %2133 = vmatprep.subr.bf16.mxu0 %v2384_v0  ;;  %2277 = vmatprep.subr.bf16.mxu1 %v2384_v0 }
  0xe8   :  { %2135 = vmatpush3.bf16.msra.mxu0 %v2509_v55  ;;  %2279 = vmatpush3.bf16.msra.mxu1 %v2509_v55 }
  0xeb   :  { %1780 = vmatmul.mubr.f32.vlgmr.msra.gmra.mrb[0].mxu0 %v2465_v24  ;;  %1990 = vmatmul.mubr.f32.vlgmr.msra.gmra.mrb[0].mxu1 %v2484_v38 }
 0x1be   :  { %v696_v1 = vpop.f32.mrb[0].mxu0  ;;  %v1337_v12 = vpop.f32.mrb[0].mxu1 }
 0x1bf   :  { %v1341_v13 = vmul.f32 %v696_v1, %v2467_v25  ;;  %v1345_v19 = vmul.f32 2.0, %v696_v1  ;;  %v1342_v30 = vmul.f32 %v1337_v12, %v2454_v18  ;;  %v1346_v37 = vmul.f32 %v1337_v12, %v2467_v25  ;;  %v1781_v0 = vpop.f32.mrb[1].mxu0  ;;  %v1991_v45 = vpop.f32.mrb[1].mxu1 }
 0x1c1   :  { %v1343_v50 = vadd.f32 %v1342_v30, %v1341_v13  ;;  %v1347_v53 = vadd.f32 %v1346_v37, %v1345_v19 }
 0x1c3   :  { %1344 = vst [vmem:[#allocation7] sm:$0xff] %v1343_v50  ;;  %1349 = vst [vmem:[#allocation7 + $0x8] sm:$0xff] %v1347_v53 }
 0x1c4   :  { %2363 = shalt.err (!%p2360_p6)
}
 0x1c5   :  { %s2364_s10 = scalar_lea.hbm %s2811_s2, 256 }
 0x1c6   :  { %p2365_p7 = scmp.ne.s32.totalorder %s2811_s2, %s2364_s10  ;;  %p2368_p8 = scmp.lt.u32.totalorder %s2364_s10, %s2811_s2 }
 0x1c8   :  { %p2370_p9 = pnand %p2368_p8, %p2365_p7 }
 0x1ca   :  { %2373 = shalt.err (!%p2370_p9)
}
 0x1cb   :  { %1361 = dma.vmem_to_hbm [thread:$0]  %s1356_s6, 256, %s2811_s2, [#allocation4], %s2381_s19, %s2381_s19, %s2382_s20  }
 0x1cc   :  { %2378 = dma.done.wait [#allocation4], 256  }
 0x1cd   :  { %2379 = vsyncadd [#allocation4], 4294967040 }
 0x1ce   :  { %1365 = vsyncpa [#allocation3], 1 }
 0x1cf   :  { %1366 = vsyncpa [#allocation6], 1 }
 0x1d0   :  { %1367 = vsyncpa [#allocation4], 1 }

</bundles_post_ra>
